<compile_context>
chip_gen: v5e
topology: v5e:2x2
jax: 0.10.0
libtpu: 0.0.40
codegen_flags: <defaults>
</compile_context>

<pallas_src>
import functools

import jax
import jax.numpy as jnp
from jax.experimental import pallas as pl
from jax.experimental.pallas import tpu as pltpu


# --------------------------------------------------------------------------- #
# Kernel
# --------------------------------------------------------------------------- #
def _channel_attention_kernel(x_ref, w1_ref, w2_ref, o_ref, sum_ref, max_ref,
                              *, inv_hw: float, hw_total: int, hw_blk: int,
                              masked: bool):
    # x_ref : VMEM (Nb, C, hw_blk)  -- spatial axis lane-dense
    # w1_ref: VMEM (hidden, C)      -- fc1 weight, native layout (C on lanes)
    # w2_ref: VMEM (hidden, C)      -- fc2 weight, pre-transposed (C on lanes)
    # o_ref : VMEM (Nb, 1, C)
    # sum_ref / max_ref: VMEM (Nb, C) f32 running accumulators
    s = pl.program_id(1)

    @pl.when(s == 0)
    def _():
        sum_ref[...] = jnp.zeros_like(sum_ref)
        max_ref[...] = jnp.full_like(max_ref, -jnp.inf)

    x = x_ref[...]                                             # (Nb, C, hw_blk)

    if masked:
        # Last spatial block is partial: grid-level pad lanes hold unspecified
        # data, so mask them (0 for sum, -inf for max).
        idx = jax.lax.broadcasted_iota(jnp.int32, x.shape, 2)
        valid = (s * hw_blk + idx) < hw_total
        x_sum = jnp.where(valid, x, jnp.zeros((), x.dtype))
        x_max = jnp.where(valid, x, jnp.full((), -jnp.inf, x.dtype))
    else:
        x_sum = x
        x_max = x

    # Running pooling: sum accumulates in f32; max exact in input dtype.
    sum_ref[...] += jnp.sum(x_sum, axis=-1, dtype=jnp.float32)         # (Nb, C)
    max_ref[...] = jnp.maximum(max_ref[...],
                               jnp.max(x_max, axis=-1).astype(jnp.float32))

    @pl.when(s == pl.num_programs(1) - 1)
    def _():
        avg = sum_ref[...] * inv_hw                            # (Nb, C) f32
        mx = max_ref[...]                                      # (Nb, C) f32
        w1 = w1_ref[...]                                       # (hidden, C)
        w2 = w2_ref[...]                                       # (hidden, C)

        # Tiny shared MLP on the VPU, lane-dense in C for both layers
        # (a 2*Nb-row MXU matmul would waste the systolic array here).
        def mlp(v):                                            # v: (Nb, C) f32
            h = jnp.sum(v[:, None, :] * w1[None, :, :], axis=-1)    # (Nb, hidden)
            h = jnp.maximum(h, 0.0)                                  # ReLU
            return jnp.sum(h[:, :, None] * w2[None, :, :], axis=1)  # (Nb, C)

        y = mlp(avg) + mlp(mx)                                 # shared fc, then add
        o_ref[...] = jax.nn.sigmoid(y).astype(o_ref.dtype)[:, None, :]


# --------------------------------------------------------------------------- #
# Block / VMEM budgeting helpers
# --------------------------------------------------------------------------- #
def _round_up(x, m):
    return (x + m - 1) // m * m


def _sublane_multiple(dtype):
    bits = jnp.dtype(dtype).itemsize * 8
    return max(8, 256 // bits)          # 8 for f32, 16 for bf16, 32 for 8-bit


def _device_kind():
    try:
        return jax.devices()[0].device_kind.lower()
    except Exception:
        return ""


def _block_target_bytes(kind):
    # Generation-aware per-step block budget (padded bytes, before 2x buffering).
    if "v7" in kind:
        return 6 << 20      # high HBM BW: amortize the ~0.35us step overhead
    if "v6" in kind:
        return 4 << 20
    if "v5" in kind and "lite" in kind:
        return 2 << 20      # v5e: 1-2 MiB already saturates ~820 GB/s
    return 4 << 20


def _multi_core(kind):
    # Chips where the "parallel" grid axis is sharded across >1 TensorCore.
    return any(tag in kind for tag in ("v7", "v4", "v5p"))


def _pick_blocks(n, c, hw, dtype, multi_core, target_bytes):
    """Pick (batch block nb, spatial block hw_blk) against PADDED VMEM bytes."""
    item = jnp.dtype(dtype).itemsize
    sub = _sublane_multiple(dtype)
    c_pad = _round_up(c, sub)
    hw_pad = _round_up(hw, 128)
    per_elem = c_pad * hw_pad * item            # one batch element, full HW

    if per_elem > target_bytes:
        # One batch element per step; tile HW in 128-lane multiples.
        hw_blk = max(128, (target_bytes // (c_pad * item)) // 128 * 128)
        hw_blk = min(hw_blk, hw_pad)
        return 1, hw_blk

    # Full HW per step; pack as many batch elements (divisors of N) as fit.
    nb = 1
    for cand in range(1, n + 1):
        if n % cand:
            continue
        if cand * per_elem > target_bytes:
            break
        if multi_core and n >= 2 and n // cand < 2:
            break   # keep >= 2 grid steps only when there are >= 2 cores
        nb = cand
    return nb, hw


def _vmem_limit_bytes(nb, c, hidden, hw_blk, dtype):
    item = jnp.dtype(dtype).itemsize
    sub = _sublane_multiple(dtype)
    c_sub = _round_up(c, sub)
    c_lane = _round_up(c, 128)
    hw_lane = _round_up(hw_blk, 128)
    x_block = nb * c_sub * hw_lane * item                     # per buffer
    w_block = _round_up(hidden, 8) * c_lane * 4               # f32 weights
    out_block = nb * 8 * c_lane * item
    scratch = 2 * _round_up(nb, 8) * c_lane * 4
    need = 2 * x_block + 2 * 2 * w_block + 2 * out_block + scratch + (2 << 20)
    return int(min(max(need, 8 << 20), 40 << 20))


# --------------------------------------------------------------------------- #
# Wrapper
# --------------------------------------------------------------------------- #
def channel_attention(x, fc1_weight, fc2_weight, *, block_batch=None,
                      block_hw=None):
    """x: (N, C, H, W). fc1_weight: (C//ratio, C[,1,1]); fc2_weight: (C, C//ratio[,1,1]).
    Returns sigmoid(fc(avgpool(x)) + fc(maxpool(x))) of shape (N, C, 1, 1)."""
    N, C, H, W = x.shape
    hidden = fc1_weight.shape[0]
    HW = H * W

    # Lane-dense view of the input; free reshape (NCHW is contiguous).
    x3 = x.reshape(N, C, HW)
    # fc1 kept in native (hidden, C) layout; fc2 transposed so both are
    # lane-dense in C inside the kernel.
    w1 = fc1_weight.reshape(hidden, C).astype(jnp.float32)        # (hidden, C)
    w2_t = fc2_weight.reshape(C, hidden).T.astype(jnp.float32)    # (hidden, C)

    kind = _device_kind()
    nb_auto, hw_auto = _pick_blocks(N, C, HW, x.dtype, _multi_core(kind),
                                    _block_target_bytes(kind))
    nb = block_batch if block_batch is not None else nb_auto
    hw_blk = block_hw if block_hw is not None else hw_auto
    if hw_blk >= HW:
        hw_blk = HW
    assert N % nb == 0, (N, nb)
    assert hw_blk == HW or hw_blk % 128 == 0, hw_blk

    n_hw_blocks = pl.cdiv(HW, hw_blk)
    masked = (HW % hw_blk) != 0
    grid = (N // nb, n_hw_blocks)

    kernel = functools.partial(
        _channel_attention_kernel,
        inv_hw=1.0 / HW, hw_total=HW, hw_blk=hw_blk, masked=masked)

    out = pl.pallas_call(
        kernel,
        out_shape=jax.ShapeDtypeStruct((N, 1, C), x.dtype),
        grid=grid,
        in_specs=[
            pl.BlockSpec((nb, C, hw_blk), lambda n, s: (n, 0, s)),
            # Weights: constant block index -> resident across the grid.
            pl.BlockSpec((hidden, C), lambda n, s: (0, 0)),
            pl.BlockSpec((hidden, C), lambda n, s: (0, 0)),
        ],
        # Output block constant across the spatial (reduction) axis; written
        # only on the final spatial step.
        out_specs=pl.BlockSpec((nb, 1, C), lambda n, s: (n, 0, 0)),
        scratch_shapes=[
            pltpu.VMEM((nb, C), jnp.float32),   # running sum
            pltpu.VMEM((nb, C), jnp.float32),   # running max
        ],
        compiler_params=pltpu.CompilerParams(
            dimension_semantics=("parallel", "arbitrary"),
            vmem_limit_bytes=_vmem_limit_bytes(nb, C, hidden, hw_blk, x.dtype)),
    )(x3, w1, w2_t)

    return out.reshape(N, C, 1, 1)


# --------------------------------------------------------------------------- #
# Pure-JAX reference (mirrors the PyTorch forward)
# --------------------------------------------------------------------------- #
def _reference(x, fc1_weight, fc2_weight):
    hidden, C = fc1_weight.shape[0], fc1_weight.shape[1]
    w1 = fc1_weight.reshape(hidden, C)
    w2 = fc2_weight.reshape(C, hidden)
    avg = jnp.mean(x, axis=(2, 3))                              # (N, C)
    mx = jnp.max(x, axis=(2, 3))                                # (N, C)

    def fc(v):
        h = jnp.einsum("nc,hc->nh", v, w1,
                       precision=jax.lax.Precision.HIGHEST)
        h = jnp.maximum(h, 0.0)
        return jnp.einsum("nh,ch->nc", h, w2,
                          precision=jax.lax.Precision.HIGHEST)

    y = jax.nn.sigmoid(fc(avg) + fc(mx))                        # (N, C)
    return y[:, :, None, None]


if __name__ == "__main__":
    key = jax.random.PRNGKey(0)
    kx, k1, k2 = jax.random.split(key, 3)

    # Small shapes consistent with the module (in_planes must be >= ratio).
    N, C, H, W = 2, 32, 16, 16
    ratio = 16
    hidden = C // ratio  # 2

    x = jax.random.normal(kx, (N, C, H, W), dtype=jnp.float32)

    # Conv2d(C, C//ratio, 1, bias=False) / Conv2d(C//ratio, C, 1, bias=False)
    bound1 = 1.0 / (C ** 0.5)
    fc1_weight = jax.random.uniform(
        k1, (hidden, C), minval=-bound1, maxval=bound1, dtype=jnp.float32)
    bound2 = 1.0 / (hidden ** 0.5)
    fc2_weight = jax.random.uniform(
        k2, (C, hidden), minval=-bound2, maxval=bound2, dtype=jnp.float32)

    out = jax.block_until_ready(channel_attention(x, fc1_weight, fc2_weight))
    ref = _reference(x, fc1_weight, fc2_weight)
    assert out.shape == (N, C, 1, 1), out.shape
    assert jnp.allclose(out, ref, atol=1e-5, rtol=1e-5), (
        float(jnp.max(jnp.abs(out - ref))))

    # Spatial-tiling + pad-masking path: HW=169 (not a multiple of 128),
    # all-negative inputs so any pad leakage into the max would be visible.
    x2 = -jnp.abs(jax.random.normal(jax.random.PRNGKey(1),
                                    (2, C, 13, 13), jnp.float32)) - 1.0
    out2 = jax.block_until_ready(
        channel_attention(x2, fc1_weight, fc2_weight,
                          block_batch=1, block_hw=128))
    ref2 = _reference(x2, fc1_weight, fc2_weight)
    assert jnp.allclose(out2, ref2, atol=1e-5, rtol=1e-5), (
        float(jnp.max(jnp.abs(out2 - ref2))))

    print("KERNEL_OK")
</pallas_src>

<mosaic_0001>
module attributes {stable_mosaic.version = 11 : i64} {
  func.func @_channel_attention_kernel(%arg0: i32, %arg1: i32, %arg2: memref<2x32x256xf32, #tpu.memory_space<vmem>>, %arg3: memref<2x32xf32, #tpu.memory_space<vmem>>, %arg4: memref<2x32xf32, #tpu.memory_space<vmem>>, %arg5: memref<2x1x32xf32, #tpu.memory_space<vmem>>, %arg6: memref<2x32xf32, #tpu.memory_space<vmem>>, %arg7: memref<2x32xf32, #tpu.memory_space<vmem>>) attributes {dimension_semantics = [#tpu.dimension_semantics<parallel>, #tpu.dimension_semantics<arbitrary>], iteration_bounds = array<i64: 1, 1>, scalar_prefetch = 0 : i64, scratch_operands = 2 : i64, tpu.core_type = #tpu.core_type<tc>, window_params = [{transform_indices = @transform_0, window_bounds = array<i64: 2, 32, 256>}, {pipeline_mode = #tpu.pipeline_mode<synchronous>, transform_indices = @transform_1, window_bounds = array<i64: 2, 32>}, {pipeline_mode = #tpu.pipeline_mode<synchronous>, transform_indices = @transform_2, window_bounds = array<i64: 2, 32>}, {transform_indices = @transform_3, window_bounds = array<i64: 2, 1, 32>}]} {
    %c0_i32 = arith.constant 0 : i32
    %0 = arith.cmpi eq, %arg1, %c0_i32 : i32
    %1 = arith.extui %0 : i1 to i32
    %c0_i32_0 = arith.constant 0 : i32
    %2 = arith.cmpi ne, %1, %c0_i32_0 : i32
    scf.if %2 {
      %cst_14 = arith.constant 0.000000e+00 : f32
      %15 = vector.broadcast %cst_14 : f32 to vector<2x32xf32>
      %c0_15 = arith.constant 0 : index
      %c0_16 = arith.constant 0 : index
      %16 = vector.load %arg6[%c0_15, %c0_16] : memref<2x32xf32, #tpu.memory_space<vmem>>, vector<2x32xf32>
      tpu.vector_store %arg6[%c0_15, %c0_16], %15 {strides = array<i32>} : memref<2x32xf32, #tpu.memory_space<vmem>>, vector<2x32xf32>,
      %cst_17 = arith.constant 0xFF800000 : f32
      %17 = vector.broadcast %cst_17 : f32 to vector<2x32xf32>
      %c0_18 = arith.constant 0 : index
      %c0_19 = arith.constant 0 : index
      %18 = vector.load %arg7[%c0_18, %c0_19] : memref<2x32xf32, #tpu.memory_space<vmem>>, vector<2x32xf32>
      tpu.vector_store %arg7[%c0_18, %c0_19], %17 {strides = array<i32>} : memref<2x32xf32, #tpu.memory_space<vmem>>, vector<2x32xf32>,
    } else {
    }
    %c0 = arith.constant 0 : index
    %c0_1 = arith.constant 0 : index
    %c0_2 = arith.constant 0 : index
    %3 = vector.load %arg2[%c0, %c0_1, %c0_2] : memref<2x32x256xf32, #tpu.memory_space<vmem>>, vector<2x32x256xf32>
    %c0_3 = arith.constant 0 : index
    %c0_4 = arith.constant 0 : index
    %4 = vector.load %arg6[%c0_3, %c0_4] : memref<2x32xf32, #tpu.memory_space<vmem>>, vector<2x32xf32>
    %cst = arith.constant dense<0.000000e+00> : vector<2x32xf32>
    %5 = vector.multi_reduction <add>, %3, %cst [2] : vector<2x32x256xf32> to vector<2x32xf32>
    %6 = arith.addf %4, %5 : vector<2x32xf32>
    %c0_5 = arith.constant 0 : index
    %c0_6 = arith.constant 0 : index
    %7 = vector.load %arg6[%c0_5, %c0_6] : memref<2x32xf32, #tpu.memory_space<vmem>>, vector<2x32xf32>
    tpu.vector_store %arg6[%c0_5, %c0_6], %6 {strides = array<i32>} : memref<2x32xf32, #tpu.memory_space<vmem>>, vector<2x32xf32>,
    %c0_7 = arith.constant 0 : index
    %c0_8 = arith.constant 0 : index
    %8 = vector.load %arg7[%c0_7, %c0_8] : memref<2x32xf32, #tpu.memory_space<vmem>>, vector<2x32xf32>
    %cst_9 = arith.constant dense<0xFF800000> : vector<2x32xf32>
    %9 = vector.multi_reduction <maximumf>, %3, %cst_9 [2] : vector<2x32x256xf32> to vector<2x32xf32>
    %10 = arith.maximumf %8, %9 : vector<2x32xf32>
    %c0_10 = arith.constant 0 : index
    %c0_11 = arith.constant 0 : index
    %11 = vector.load %arg7[%c0_10, %c0_11] : memref<2x32xf32, #tpu.memory_space<vmem>>, vector<2x32xf32>
    tpu.vector_store %arg7[%c0_10, %c0_11], %10 {strides = array<i32>} : memref<2x32xf32, #tpu.memory_space<vmem>>, vector<2x32xf32>,
    %c0_i32_12 = arith.constant 0 : i32
    %12 = arith.cmpi eq, %arg1, %c0_i32_12 : i32
    %13 = arith.extui %12 : i1 to i32
    %c0_i32_13 = arith.constant 0 : i32
    %14 = arith.cmpi ne, %13, %c0_i32_13 : i32
    scf.if %14 {
      %c0_14 = arith.constant 0 : index
      %c0_15 = arith.constant 0 : index
      %15 = vector.load %arg6[%c0_14, %c0_15] : memref<2x32xf32, #tpu.memory_space<vmem>>, vector<2x32xf32>
      %cst_16 = arith.constant 3.906250e-03 : f32
      %16 = vector.broadcast %cst_16 : f32 to vector<2x32xf32>
      %17 = arith.mulf %15, %16 : vector<2x32xf32>
      %c0_17 = arith.constant 0 : index
      %c0_18 = arith.constant 0 : index
      %18 = vector.load %arg7[%c0_17, %c0_18] : memref<2x32xf32, #tpu.memory_space<vmem>>, vector<2x32xf32>
      %c0_19 = arith.constant 0 : index
      %c0_20 = arith.constant 0 : index
      %19 = vector.load %arg3[%c0_19, %c0_20] : memref<2x32xf32, #tpu.memory_space<vmem>>, vector<2x32xf32>
      %c0_21 = arith.constant 0 : index
      %c0_22 = arith.constant 0 : index
      %20 = vector.load %arg4[%c0_21, %c0_22] : memref<2x32xf32, #tpu.memory_space<vmem>>, vector<2x32xf32>
      %21 = vector.shape_cast %17 : vector<2x32xf32> to vector<2x1x32xf32>
      %22 = vector.shape_cast %19 : vector<2x32xf32> to vector<1x2x32xf32>
      %23 = vector.broadcast %21 : vector<2x1x32xf32> to vector<2x2x32xf32>
      %24 = vector.broadcast %22 : vector<1x2x32xf32> to vector<2x2x32xf32>
      %25 = arith.mulf %23, %24 : vector<2x2x32xf32>
      %cst_23 = arith.constant dense<0.000000e+00> : vector<2x2xf32>
      %26 = vector.multi_reduction <add>, %25, %cst_23 [2] : vector<2x2x32xf32> to vector<2x2xf32>
      %cst_24 = arith.constant 0.000000e+00 : f32
      %27 = vector.broadcast %cst_24 : f32 to vector<2x2xf32>
      %28 = arith.maximumf %26, %27 : vector<2x2xf32>
      %29 = vector.shape_cast %28 : vector<2x2xf32> to vector<2x2x1xf32>
      %30 = vector.shape_cast %20 : vector<2x32xf32> to vector<1x2x32xf32>
      %31 = vector.broadcast %29 : vector<2x2x1xf32> to vector<2x2x32xf32>
      %32 = vector.broadcast %30 : vector<1x2x32xf32> to vector<2x2x32xf32>
      %33 = arith.mulf %31, %32 : vector<2x2x32xf32>
      %cst_25 = arith.constant dense<0.000000e+00> : vector<2x32xf32>
      %34 = vector.multi_reduction <add>, %33, %cst_25 [1] : vector<2x2x32xf32> to vector<2x32xf32>
      %35 = vector.shape_cast %18 : vector<2x32xf32> to vector<2x1x32xf32>
      %36 = vector.shape_cast %19 : vector<2x32xf32> to vector<1x2x32xf32>
      %37 = vector.broadcast %35 : vector<2x1x32xf32> to vector<2x2x32xf32>
      %38 = vector.broadcast %36 : vector<1x2x32xf32> to vector<2x2x32xf32>
      %39 = arith.mulf %37, %38 : vector<2x2x32xf32>
      %cst_26 = arith.constant dense<0.000000e+00> : vector<2x2xf32>
      %40 = vector.multi_reduction <add>, %39, %cst_26 [2] : vector<2x2x32xf32> to vector<2x2xf32>
      %cst_27 = arith.constant 0.000000e+00 : f32
      %41 = vector.broadcast %cst_27 : f32 to vector<2x2xf32>
      %42 = arith.maximumf %40, %41 : vector<2x2xf32>
      %43 = vector.shape_cast %42 : vector<2x2xf32> to vector<2x2x1xf32>
      %44 = vector.shape_cast %20 : vector<2x32xf32> to vector<1x2x32xf32>
      %45 = vector.broadcast %43 : vector<2x2x1xf32> to vector<2x2x32xf32>
      %46 = vector.broadcast %44 : vector<1x2x32xf32> to vector<2x2x32xf32>
      %47 = arith.mulf %45, %46 : vector<2x2x32xf32>
      %cst_28 = arith.constant dense<0.000000e+00> : vector<2x32xf32>
      %48 = vector.multi_reduction <add>, %47, %cst_28 [1] : vector<2x2x32xf32> to vector<2x32xf32>
      %49 = arith.addf %34, %48 : vector<2x32xf32>
      %50 = arith.negf %49 : vector<2x32xf32>
      %51 = math.exp %50 : vector<2x32xf32>
      %cst_29 = arith.constant 1.000000e+00 : f32
      %52 = vector.broadcast %cst_29 : f32 to vector<2x32xf32>
      %53 = arith.addf %52, %51 : vector<2x32xf32>
      %54 = arith.divf %52, %53 : vector<2x32xf32>
      %55 = vector.shape_cast %54 : vector<2x32xf32> to vector<2x1x32xf32>
      %c0_30 = arith.constant 0 : index
      %c0_31 = arith.constant 0 : index
      %c0_32 = arith.constant 0 : index
      %56 = vector.load %arg5[%c0_30, %c0_31, %c0_32] : memref<2x1x32xf32, #tpu.memory_space<vmem>>, vector<2x1x32xf32>
      tpu.vector_store %arg5[%c0_30, %c0_31, %c0_32], %55 {strides = array<i32>} : memref<2x1x32xf32, #tpu.memory_space<vmem>>, vector<2x1x32xf32>,
    } else {
    }
    return
  }
  func.func @transform_0(%arg0: i32, %arg1: i32) -> (i32, i32, i32) {
    %c0_i32 = arith.constant 0 : i32
    %c0_i32_0 = arith.constant 0 : i32
    return %arg0, %c0_i32, %arg1 : i32, i32, i32
  }
  func.func @transform_1(%arg0: i32, %arg1: i32) -> (i32, i32) {
    %c0_i32 = arith.constant 0 : i32
    %c0_i32_0 = arith.constant 0 : i32
    %c0_i32_1 = arith.constant 0 : i32
    return %c0_i32, %c0_i32_0 : i32, i32
  }
  func.func @transform_2(%arg0: i32, %arg1: i32) -> (i32, i32) {
    %c0_i32 = arith.constant 0 : i32
    %c0_i32_0 = arith.constant 0 : i32
    %c0_i32_1 = arith.constant 0 : i32
    return %c0_i32, %c0_i32_0 : i32, i32
  }
  func.func @transform_3(%arg0: i32, %arg1: i32) -> (i32, i32, i32) {
    %c0_i32 = arith.constant 0 : i32
    %c0_i32_0 = arith.constant 0 : i32
    %c0_i32_1 = arith.constant 0 : i32
    return %arg0, %c0_i32, %c0_i32_0 : i32, i32, i32
  }
}

</mosaic_0001>

<bundles_post_ra>
// kernel: tpu_custom_call.1
= control target key start
LH: loop header
LB: loop body
LE: loop exit
PB: predicated region body
PF: predicated region fallthrough
CT: control target
= control target key end

     0   :  { %8 = vsyncpa [#allocation5], 0  ;;  %s519_s0 = inlined_call_operand.hbm [shape: f32[2,32,256], index: 0, kind: input, shape index: {}]   ;;  %s520_s1 = inlined_call_operand.hbm [shape: f32[2,32], index: 1, kind: input, shape index: {}]   ;;  %s521_s2 = inlined_call_operand.hbm [shape: f32[2,32], index: 2, kind: input, shape index: {}]   ;;  %s522_s3 = inlined_call_operand.hbm [shape: f32[2,1,32], index: 3, kind: output, shape index: {}]  }
   0x1   :  { %9 = vsyncpa [#allocation8], 0  ;;  %s29_s14 = sshll.u32 %s520_s1, 4  ;;  %s30_s14 = int_to_ptr.hbm [resolvable:$true] %s29_s14 }
   0x2   :  { %10 = vsyncpa [#allocation6], 0  ;;  %s449_s15 = smov [#allocation7]   ;;  %s15_s19 = sshll.u32 %s519_s0, 4  ;;  %s16_s19 = int_to_ptr.hbm [resolvable:$true] %s15_s19 }
   0x3   :  { %s31_s16 = sshll.u32 %s449_s15, 4  ;;  %s450_s20 = smov [#allocation4]   ;;  %s32_s16 = int_to_ptr.vmem [resolvable:$true] %s31_s16 }
   0x4   :  { %34 = dma.hbm_to_vmem [thread:$0]  %s30_s14, 32, %s32_s16, [#allocation8]  }
   0x5   :  { %s17_s21 = sshll.u32 %s450_s20, 4  ;;  %s451_s22 = smov 256   ;;  %s18_s21 = int_to_ptr.vmem [resolvable:$true] %s17_s21 }
   0x6   :  { %s452_s23 = smov 16   ;;  %s40_s25 = sshll.u32 %s521_s2, 4  ;;  %s41_s25 = int_to_ptr.hbm [resolvable:$true] %s40_s25 }
   0x7   :  { %23 = dma.hbm_to_vmem [thread:$0]  %s16_s19, 2048, %s18_s21, [#allocation5], %s451_s22, %s451_s22, %s452_s23  }
   0x8   :  { %s453_s26 = smov [#allocation9]  }
   0x9   :  { %s42_s27 = sshll.u32 %s453_s26, 4  ;;  %s43_s27 = int_to_ptr.vmem [resolvable:$true] %s42_s27 }
   0xa   :  { %45 = dma.hbm_to_vmem [thread:$0]  %s41_s25, 32, %s43_s27, [#allocation8]  }
   0xb   :  { %443 = dma.done.wait [#allocation5], 2048  }
   0xc   :  { %444 = vsyncadd [#allocation5], 4294965248 }
   0xd   :  { %445 = dma.done.wait [#allocation8], 64  }
   0xe   :  { %446 = vsyncadd [#allocation8], 4294967232  ;;  %v73_v0 = vld [vmem:[#allocation4 + $0x40] sm:$0xff]  ;;  %v74_v1 = vld [vmem:[#allocation4 + $0x48] sm:$0xff]  ;;  %vm62_vm0 = vcmask 254976   ;;  %v454_v32 = vmov 0.0   ;;  %v114_v34 = vlaneseq }
   0xf   :  { %v65_v2 = vld [vmem:[#allocation4] sm:$0xff]  ;;  %v94_v3 = vadd.f32 %v74_v1, %v73_v0  ;;  %v66_v4 = vld [vmem:[#allocation4 + $0x8] sm:$0xff]  ;;  %v75_v9 = vld [vmem:[#allocation4 + $0x50] sm:$0xff]  ;;  %v155_v25 = vmax.f32 %v73_v0, %v74_v1  ;;  %63 = vst.msk [vmem:[#allocation2] sm:$0x3] %vm62_vm0, %v454_v32  ;;  %v455_v38 = vmov -inf  }
  0x10   :  { %v69_v5 = vld [vmem:[#allocation4 + $0x20] sm:$0xff]  ;;  %v70_v6 = vld [vmem:[#allocation4 + $0x28] sm:$0xff]  ;;  %v82_v7 = vadd.f32 %v66_v4, %v65_v2  ;;  %v76_v10 = vld [vmem:[#allocation4 + $0x58] sm:$0xff]  ;;  %v143_v24 = vmax.f32 %v65_v2, %v66_v4  ;;  %v115_v37 = vand.u32 127, %v114_v34  ;;  %64 = vst.msk [vmem:[#allocation3] sm:$0x3] %vm62_vm0, %v455_v38 }
  0x11   :  { %v88_v8 = vadd.f32 %v70_v6, %v69_v5  ;;  %95 = vadd.xlane.f32.xlu1 %v94_v3  ;;  %v67_v11 = vld [vmem:[#allocation4 + $0x10] sm:$0xff]  ;;  %v68_v12 = vld [vmem:[#allocation4 + $0x18] sm:$0xff]  ;;  %v77_v13 = vld [vmem:[#allocation4 + $0x60] sm:$0xff]  ;;  %v97_v15 = vadd.f32 %v76_v10, %v75_v9  ;;  %v158_v27 = vmax.f32 %v75_v9, %v76_v10  ;;  %v149_v29 = vmax.f32 %v69_v5, %v70_v6  ;;  %s456_s0 = smov [#allocation10]   ;;  %s314_s30 = sshll.u32 %s522_s3, 4  ;;  %s315_s30 = int_to_ptr.hbm [resolvable:$true] %s314_s30 }
  0x12   :  { %83 = vadd.xlane.f32.xlu0 %v82_v7  ;;  %v78_v14 = vld [vmem:[#allocation4 + $0x68] sm:$0xff]  ;;  %v85_v16 = vadd.f32 %v68_v12, %v67_v11  ;;  %v79_v18 = vld [vmem:[#allocation4 + $0x70] sm:$0xff]  ;;  %v80_v19 = vld [vmem:[#allocation4 + $0x78] sm:$0xff]  ;;  %v146_v26 = vmax.f32 %v67_v11, %v68_v12  ;;  %v117_v39 = vadd.s32 4294967288, %v115_v37  ;;  %v121_v43 = vadd.s32 4294967280, %v115_v37  ;;  %s312_s2 = sshll.u32 %s456_s0, 4  ;;  %s313_s2 = int_to_ptr.vmem [resolvable:$true] %s312_s2 }
  0x13   :  { %89 = vadd.xlane.f32.xlu2 %v88_v8  ;;  %v100_v17 = vadd.f32 %v78_v14, %v77_v13  ;;  %v71_v20 = vld [vmem:[#allocation4 + $0x30] sm:$0xff]  ;;  %v72_v21 = vld [vmem:[#allocation4 + $0x38] sm:$0xff]  ;;  %v103_v22 = vadd.f32 %v80_v19, %v79_v18  ;;  %v161_v28 = vmax.f32 %v77_v13, %v78_v14  ;;  %v164_v31 = vmax.f32 %v79_v18, %v80_v19  ;;  %v199_v7 = vld [vmem:[#allocation7] sm:$0x3]  ;;  %s457_s4 = smov 1  }
  0x14   :  { %v91_v23 = vadd.f32 %v72_v21, %v71_v20  ;;  %v152_v30 = vmax.f32 %v71_v20, %v72_v21  ;;  %vm119_vm1 = vcmask 130112   ;;  %v125_v47 = vadd.s32 4294967272, %v115_v37 }
  0x15   :  { %vm123_vm2 = vcmask 195712   ;;  %vm127_vm3 = vcmask 261312   ;;  %vm136_vm4 = vcmask 1041409   ;;  %vm305_vm9 = vcmask 253952  }
  0x16   :  { %v81_v61 = vld [vmem:[#allocation2] sm:$0x3] }
  0x19   :  { %98 = vadd.xlane.f32.xlu1 %v97_v15 }
  0x1a   :  { %86 = vadd.xlane.f32.xlu0 %v85_v16 }
  0x1b   :  { %101 = vadd.xlane.f32.xlu2 %v100_v17 }
  0x21   :  { %104 = vadd.xlane.f32.xlu1 %v103_v22 }
  0x22   :  { %92 = vadd.xlane.f32.xlu0 %v91_v23 }
  0x23   :  { %144 = vmax.xlane.f32.xlu2 %v143_v24 }
  0x29   :  { %156 = vmax.xlane.f32.xlu1 %v155_v25 }
  0x2a   :  { %147 = vmax.xlane.f32.xlu0 %v146_v26 }
  0x2b   :  { %159 = vmax.xlane.f32.xlu2 %v158_v27 }
  0x31   :  { %162 = vmax.xlane.f32.xlu1 %v161_v28 }
  0x32   :  { %150 = vmax.xlane.f32.xlu0 %v149_v29 }
  0x33   :  { %153 = vmax.xlane.f32.xlu2 %v152_v30  ;;  %v142_v30 = vld [vmem:[#allocation3] sm:$0x3] }
  0x3a   :  { %165 = vmax.xlane.f32.xlu0 %v164_v31 }
  0x84   :  { %v96_v33 = vpop.xlane.xlu1 %95 }
  0x85   :  { %v84_v35 = vpop.xlane.xlu0 %83  ;;  %v129_v44 = vperm.slane %v96_v33, %v115_v37 }
  0x86   :  { %v90_v36 = vpop.xlane.xlu2 %89  ;;  %v116_v48 = vperm.slane %v84_v35, %v115_v37 }
  0x87   :  { %v122_v50 = vperm.slane %v90_v36, %v121_v43 }
  0x8c   :  { %v99_v40 = vpop.xlane.xlu1 %98 }
  0x8d   :  { %v87_v41 = vpop.xlane.xlu0 %86  ;;  %v130_v45 = vperm.slane %v99_v40, %v117_v39 }
  0x8e   :  { %v102_v42 = vpop.xlane.xlu2 %101  ;;  %v118_v46 = vperm.slane %v87_v41, %v117_v39 }
  0x8f   :  { %v132_v49 = vperm.slane %v102_v42, %v121_v43  ;;  %v131_v51 = vsel %vm119_vm1, %v130_v45, %v129_v44 }
  0x90   :  { %v120_v52 = vsel %vm119_vm1, %v118_v46, %v116_v48  ;;  %v200_v46 = vld [vmem:[#allocation9] sm:$0x3] }
  0x91   :  { %v133_v57 = vsel %vm123_vm2, %v132_v49, %v131_v51  ;;  %v124_v60 = vsel %vm123_vm2, %v122_v50, %v120_v52 }
  0x94   :  { %v105_v53 = vpop.xlane.xlu1 %104 }
  0x95   :  { %v134_v54 = vperm.slane %v105_v53, %v125_v47  ;;  %v93_v55 = vpop.xlane.xlu0 %92 }
  0x96   :  { %v145_v56 = vpop.xlane.xlu2 %144  ;;  %v126_v58 = vperm.slane %v93_v55, %v125_v47 }
  0x97   :  { %v135_v59 = vsel %vm127_vm3, %v134_v54, %v133_v57  ;;  %v175_v10 = vperm.slane %v145_v56, %v115_v37 }
  0x98   :  { %v128_v62 = vsel %vm127_vm3, %v126_v58, %v124_v60 }
  0x99   :  { %v137_v63 = vsel %vm136_vm4, %v135_v59, %v128_v62 }
  0x9a   :  { %v139_v0 = vadd.f32 %v137_v63, %v81_v61 }
  0x9c   :  { %141 = vst.msk [vmem:[#allocation2] sm:$0x3] %vm62_vm0, %v139_v0  ;;  %v157_v2 = vpop.xlane.xlu1 %156 }
  0x9d   :  { %v148_v1 = vpop.xlane.xlu0 %147  ;;  %v182_v11 = vperm.slane %v157_v2, %v115_v37 }
  0x9e   :  { %v160_v3 = vpop.xlane.xlu2 %159  ;;  %v176_v12 = vperm.slane %v148_v1, %v117_v39 }
  0x9f   :  { %v183_v13 = vperm.slane %v160_v3, %v117_v39 }
  0xa0   :  { %v177_v22 = vsel %vm119_vm1, %v176_v12, %v175_v10 }
  0xa1   :  { %v184_v23 = vsel %vm119_vm1, %v183_v13, %v182_v11 }
  0xa3   :  { %v196_v4 = vld [vmem:[#allocation2] sm:$0x3] }
  0xa4   :  { %v197_v5 = vmul.f32 0.00390625, %v196_v4  ;;  %v163_v14 = vpop.xlane.xlu1 %162 }
  0xa5   :  { %v151_v6 = vpop.xlane.xlu0 %150  ;;  %v185_v21 = vperm.slane %v163_v14, %v121_v43 }
  0xa6   :  { %v203_v8 = vperm.slane %v197_v5, 0  ;;  %v202_v9 = vrot.slane %v197_v5, 1  ;;  %v178_v17 = vperm.slane %v151_v6, %v121_v43  ;;  %v154_v18 = vpop.xlane.xlu2 %153 }
  0xa7   :  { %v180_v24 = vperm.slane %v154_v18, %v125_v47  ;;  %v186_v29 = vsel %vm123_vm2, %v185_v21, %v184_v23 }
  0xa8   :  { %v207_v15 = vmul.f32 %v203_v8, %v199_v7  ;;  %v204_v16 = vperm.slane %v202_v9, 0  ;;  %v179_v26 = vsel %vm123_vm2, %v178_v17, %v177_v22 }
  0xa9   :  { %v181_v31 = vsel %vm127_vm3, %v180_v24, %v179_v26 }
  0xaa   :  { %v209_v19 = vsel %vm62_vm0, %v207_v15, 0.0  ;;  %v208_v20 = vmul.f32 %v204_v16, %v199_v7 }
  0xab   :  { %210 = vadd.xlane.f32.xlu1 %v209_v19 }
  0xac   :  { %v212_v25 = vsel %vm62_vm0, %v208_v20, 0.0 }
  0xad   :  { %v166_v27 = vpop.xlane.xlu0 %165  ;;  %213 = vadd.xlane.f32.xlu2 %v212_v25 }
  0xae   :  { %v187_v28 = vperm.slane %v166_v27, %v125_v47 }
  0xb0   :  { %v188_v32 = vsel %vm127_vm3, %v187_v28, %v186_v29 }
  0xb1   :  { %v189_v33 = vsel %vm136_vm4, %v188_v32, %v181_v31 }
  0xb2   :  { %v191_v34 = vmax.f32 %v142_v30, %v189_v33 }
  0xb4   :  { %192 = vst.msk [vmem:[#allocation3] sm:$0x3] %vm62_vm0, %v191_v34 }
  0xbb   :  { %v198_v35 = vld [vmem:[#allocation3] sm:$0x3] }
  0xbc   :  { %v235_v36 = vperm.slane %v198_v35, 0  ;;  %v234_v37 = vrot.slane %v198_v35, 1 }
  0xbe   :  { %v239_v38 = vmul.f32 %v235_v36, %v199_v7  ;;  %v236_v39 = vperm.slane %v234_v37, 0 }
  0xc0   :  { %v241_v40 = vsel %vm62_vm0, %v239_v38, 0.0  ;;  %v240_v41 = vmul.f32 %v236_v39, %v199_v7 }
  0xc1   :  { %242 = vadd.xlane.f32.xlu0 %v241_v40 }
  0xc2   :  { %v244_v42 = vsel %vm62_vm0, %v240_v41, 0.0 }
  0xc3   :  { %245 = vadd.xlane.f32.xlu1 %v244_v42 }
 0x11e   :  { %v211_v43 = vpop.xlane.xlu1 %210 }
 0x11f   :  { %v215_v45 = vmax.f32 %v211_v43, 0.0 }
 0x120   :  { %v214_v44 = vpop.xlane.xlu2 %213 }
 0x121   :  { %v216_v47 = vmax.f32 %v214_v44, 0.0  ;;  %v217_v48 = vmul.f32 %v215_v45, %v200_v46 }
 0x123   :  { %v218_v49 = vmul.f32 %v216_v47, %v200_v46  ;;  %v219_v50 = vsel %vm62_vm0, %v217_v48, 0.0 }
 0x124   :  { %v220_v52 = vrot.slane %v219_v50, 4 }
 0x125   :  { %v226_v51 = vsel %vm62_vm0, %v218_v49, 0.0 }
 0x126   :  { %v227_v53 = vrot.slane %v226_v51, 4  ;;  %v221_v54 = vadd.f32 %v220_v52, %v219_v50 }
 0x128   :  { %v228_v57 = vadd.f32 %v227_v53, %v226_v51  ;;  %v222_v61 = vrot.slane %v221_v54, 2 }
 0x12a   :  { %v229_v0 = vrot.slane %v228_v57, 2  ;;  %v223_v3 = vadd.f32 %v222_v61, %v221_v54 }
 0x12c   :  { %v230_v6 = vadd.f32 %v229_v0, %v228_v57  ;;  %v224_v9 = vrot.slane %v223_v3, 1 }
 0x12e   :  { %v231_v12 = vrot.slane %v230_v6, 1  ;;  %v225_v15 = vadd.f32 %v224_v9, %v223_v3 }
 0x130   :  { %v232_v18 = vadd.f32 %v231_v12, %v230_v6 }
 0x134   :  { %v243_v55 = vpop.xlane.xlu0 %242 }
 0x135   :  { %v247_v56 = vmax.f32 %v243_v55, 0.0 }
 0x136   :  { %v246_v58 = vpop.xlane.xlu1 %245 }
 0x137   :  { %v249_v59 = vmul.f32 %v247_v56, %v200_v46  ;;  %v248_v60 = vmax.f32 %v246_v58, 0.0 }
 0x139   :  { %v251_v62 = vsel %vm62_vm0, %v249_v59, 0.0  ;;  %v250_v63 = vmul.f32 %v248_v60, %v200_v46 }
 0x13a   :  { %v252_v1 = vrot.slane %v251_v62, 4 }
 0x13b   :  { %v258_v2 = vsel %vm62_vm0, %v250_v63, 0.0 }
 0x13c   :  { %v253_v4 = vadd.f32 %v252_v1, %v251_v62  ;;  %v259_v5 = vrot.slane %v258_v2, 4 }
 0x13e   :  { %v254_v7 = vrot.slane %v253_v4, 2  ;;  %v260_v8 = vadd.f32 %v259_v5, %v258_v2 }
 0x140   :  { %v255_v10 = vadd.f32 %v254_v7, %v253_v4  ;;  %v261_v11 = vrot.slane %v260_v8, 2 }
 0x142   :  { %v256_v13 = vrot.slane %v255_v10, 1  ;;  %v262_v14 = vadd.f32 %v261_v11, %v260_v8 }
 0x144   :  { %v257_v16 = vadd.f32 %v256_v13, %v255_v10  ;;  %v263_v17 = vrot.slane %v262_v14, 1 }
 0x146   :  { %v265_v19 = vadd.f32 %v257_v16, %v225_v15  ;;  %v264_v20 = vadd.f32 %v263_v17, %v262_v14 }
 0x148   :  { %v328_v21 = vmul.f32 -1.442695, %v265_v19  ;;  %v266_v22 = vadd.f32 %v264_v20, %v232_v18 }
 0x14a   :  { %339 = vpow2.f32 %v328_v21  ;;  %v329_v23 = vmul.f32 -1.442695, %v266_v22 }
 0x14c   :  { %341 = vpow2.f32 %v329_v23 }
 0x150   :  { %v340_v24 = vpop.eup %339 }
 0x151   :  { %v273_v25 = vadd.f32 1.0, %v340_v24 }
 0x152   :  { %v342_v26 = vpop.eup %341 }
 0x153   :  { %343 = vrcp.f32 %v273_v25  ;;  %v274_v27 = vadd.f32 1.0, %v342_v26  ;;  %v286_v33 = vand.u32 2147483648, %v273_v25  ;;  %v284_v35 = vand.u32 2147483647, %v273_v25 }
 0x154   :  { %vm280_vm6 = vweird.f32 %v273_v25 }
 0x155   :  { %345 = vrcp.f32 %v274_v27  ;;  %v301_v37 = vand.u32 2147483648, %v274_v27  ;;  %v299_v40 = vand.u32 2147483647, %v274_v27  ;;  %v287_v41 = vor.u32 1.1754944e-38, %v286_v33 }
 0x156   :  { %vm285_vm10 = vcmp.eq.f32.partialorder %v284_v35, 8.507059e+37  ;;  %vm295_vm11 = vweird.f32 %v274_v27 }
 0x157   :  { %v302_v45 = vor.u32 1.1754944e-38, %v301_v37  ;;  %vm300_vm13 = vcmp.eq.f32.partialorder %v299_v40, 8.507059e+37 }
 0x159   :  { %v344_v28 = vpop.eup %343 }
 0x15a   :  { %v276_v29 = vmul.f32 %v344_v28, %v273_v25  ;;  %vm281_vm5 = vweird.f32 %v344_v28 }
 0x15b   :  { %v346_v30 = vpop.eup %345  ;;  %vm282_vm8 = vmor %vm280_vm6, %vm281_vm5 }
 0x15c   :  { %v277_v31 = vsub.f32 1.0, %v276_v29  ;;  %v291_v32 = vmul.f32 %v346_v30, %v274_v27  ;;  %vm296_vm7 = vweird.f32 %v346_v30 }
 0x15d   :  { %vm297_vm12 = vmor %vm295_vm11, %vm296_vm7 }
 0x15e   :  { %v278_v34 = vmul.f32 %v344_v28, %v277_v31  ;;  %v292_v36 = vsub.f32 1.0, %v291_v32 }
 0x160   :  { %v279_v38 = vadd.f32 %v344_v28, %v278_v34  ;;  %v293_v39 = vmul.f32 %v346_v30, %v292_v36 }
 0x162   :  { %v283_v42 = vsel %vm282_vm8, %v344_v28, %v279_v38  ;;  %v294_v43 = vadd.f32 %v346_v30, %v293_v39 }
 0x163   :  { %v288_v44 = vsel %vm285_vm10, %v287_v41, %v283_v42 }
 0x164   :  { %v298_v46 = vsel %vm297_vm12, %v346_v30, %v294_v43  ;;  %306 = vst.msk [vmem:[#allocation10] sm:$0x1] %vm305_vm9, %v288_v44 }
 0x165   :  { %v303_v47 = vsel %vm300_vm13, %v302_v45, %v298_v46 }
 0x166   :  { %307 = vst.msk [vmem:[#allocation10 + $0x1] sm:$0x1] %vm305_vm9, %v303_v47 }
 0x167   :  { %320 = dma.vmem_to_hbm [thread:$0]  %s313_s2, 32, %s315_s30, [#allocation6], %s452_s23, %s452_s23, %s457_s4  }
 0x168   :  { %447 = dma.done.wait [#allocation6], 32  }
 0x169   :  { %448 = vsyncadd [#allocation6], 4294967264 }
 0x16a   :  { %325 = vsyncpa [#allocation5], 1 }
 0x16b   :  { %326 = vsyncpa [#allocation8], 1 }
 0x16c   :  { %327 = vsyncpa [#allocation6], 1 }

</bundles_post_ra>
